<compile_context>
chip_gen: v6e
topology: v6e:2x2x1
jax: 0.10.0
libtpu: 0.0.40
codegen_flags: <defaults>
</compile_context>

<pallas_src>
import functools
import math

import jax
import jax.numpy as jnp
from jax.experimental import pallas as pl
from jax.experimental.pallas import tpu as pltpu

_LOG_01 = math.log(0.1)


# ---------------------------------------------------------------------------
# helpers
# ---------------------------------------------------------------------------
def _round_up(x, m):
    return (x + m - 1) // m * m


@functools.lru_cache(maxsize=1)
def _vmem_budgets():
    """(physical VMEM, double-buffered slab budget, vmem_limit_bytes) — generation aware."""
    try:
        cap = int(pltpu.get_tpu_info().vmem_capacity_bytes)
    except Exception:
        cap = 64 << 20                       # conservative fallback (v7x physical)
    slab_budget = cap * 3 // 8               # ~48 MiB on 128-MiB chips, ~24 MiB on v7x
    vmem_limit = cap * 3 // 4                # ~96 MiB / ~48 MiB (above scoped defaults)
    return cap, slab_budget, vmem_limit


def _block_bytes(block_shape, dtype):
    """VMEM footprint of one block, accounting for (sublane, lane) tile padding
    of the last two dims ([R1])."""
    itemsize = jnp.dtype(dtype).itemsize
    sub = max(8, 32 // itemsize)             # 8 (f32) / 16 (bf16) / 32 (int8)
    dims = list(block_shape)
    dims[-1] = _round_up(int(dims[-1]), 128)
    if len(dims) >= 2:
        dims[-2] = _round_up(int(dims[-2]), sub)
    n = 1
    for d in dims:
        n *= int(d)
    return n * itemsize


def _pick_tile_nh(nh, bytes_at, slab_budget, max_tile):
    """Largest multiple-of-8 station tile that (a) fits the double-buffered slab
    budget and (b) leaves >=2 (>=4 when possible) grid steps ([R5/R8])."""
    if nh <= 8:
        return nh                             # single full-extent block
    if nh >= 32:
        min_steps = 4
    elif nh >= 16:
        min_steps = 2
    else:
        min_steps = 1
    cap = max(8, (nh // min_steps) // 8 * 8)
    cap = min(cap, max(8, max_tile // 8 * 8))
    th = cap
    while th > 8 and 2 * bytes_at(th) > slab_budget:
        th -= 8
    # TODO(synk): if even TH=8 exceeds the budget (extreme Nc*Nt), add a second
    # ("arbitrary") grid axis over the Clist axis with resident running max/min.
    return th


def _pick_rng_chunk(nc, th, other_dim, lane_reduce):
    """Chunk length along the Clist axis for the in-kernel streamed max/min ([R6])."""
    align = 128 if lane_reduce else 8
    if nc <= align:
        return max(1, nc)
    other_pad = _round_up(other_dim, 8 if lane_reduce else 128)
    per_unit = max(1, th * other_pad * 4)              # f32 bytes per Clist element
    chunk = ((512 << 10) // per_unit) // align * align  # keep ~<=512 KiB live / chunk
    min_chunk = _round_up(-(-nc // 16), align)          # <=16 unrolled chunks
    chunk = max(align, min_chunk, chunk)
    return min(chunk, nc)


def _laplacian(n):
    """Tridiagonal smoothing operator used by the torch module (reference only)."""
    L = (jnp.diag(-jnp.ones(n - 1), 1)
         + jnp.diag(-jnp.ones(n - 1), -1)
         + jnp.diag(2.0 * jnp.ones(n)))
    L = L.at[0, 0].set(1.0).at[n - 1, n - 1].set(1.0)
    return L.astype(jnp.float32)


# ---------------------------------------------------------------------------
# Pallas kernel
# ---------------------------------------------------------------------------
def _build_kernel(*, use_det, det_clist_axis, nc, rng_chunk, use_lv, use_lh,
                  out_a, out_rho, compress, normalized, compress_method,
                  initial_method, vp_vs_ratio, damp_vertical, damp_horizontal,
                  n_t, n_v):
    inv_nt = 1.0 / float(n_t)
    v_scale = float(damp_vertical) / float(n_v)
    h_scale = float(damp_horizontal) / float(n_v)

    def kernel(*refs):
        it = iter(refs)
        F_ref = next(it)
        det_ref = next(it) if use_det else None
        b_ref = next(it)
        bl_ref = next(it) if use_lv else None     # b[i, j-1] (replicate at j=0)
        br_ref = next(it) if use_lv else None     # b[i, j+1] (replicate at j=Nv-1)
        bu_ref = next(it) if use_lh else None     # b[i-1, j] (replicate at i=0)
        bd_ref = next(it) if use_lh else None     # b[i+1, j] (replicate at i=Nh-1)
        out_ref = next(it)
        a_ref = next(it) if out_a else None
        rho_ref = next(it) if out_rho else None

        # ----- misfit compression / normalization (per station row) -----
        F = F_ref[...].astype(jnp.float32)                          # (TH, Nt)
        if compress:
            if normalized:
                # [R6] Single streamed pass over the Clist axis: chunked running
                # max/min (each det chunk is read from VMEM once, upcast to f32
                # so bf16 inputs are safe [R7], and reduced for both max & min).
                run_max = None
                run_min = None
                for lo in range(0, nc, rng_chunk):
                    sz = min(rng_chunk, nc - lo)
                    if det_clist_axis == 1:       # native (TH, Nc, Nt)
                        blk = det_ref[:, lo:lo + sz, :].astype(jnp.float32)
                        cmax = jnp.max(blk, axis=1)
                        cmin = jnp.min(blk, axis=1)
                    else:                         # lane-dense (TH, Nt, Nc)  [R2]
                        blk = det_ref[:, :, lo:lo + sz].astype(jnp.float32)
                        cmax = jnp.max(blk, axis=2)
                        cmin = jnp.min(blk, axis=2)
                    run_max = cmax if run_max is None else jnp.maximum(run_max, cmax)
                    run_min = cmin if run_min is None else jnp.minimum(run_min, cmin)
                rng = run_max - run_min           # f32 subtraction (no bf16 cancellation)
                F = F / rng                        # exact division (rng may be tiny)
                if compress_method == 'log':
                    F = jnp.log(jnp.abs(F) + 1.0)
                elif compress_method == 'exp':
                    # 0.1 ** |F| == exp(log(0.1) * |F|)  -> EUP, off the VALU.
                    # (torch also renormalizes det here, but det is unused
                    #  afterwards, so it is skipped.)
                    F = jnp.exp(_LOG_01 * jnp.abs(F)) - 1.0
            else:
                F = jnp.exp(_LOG_01 * jnp.abs(F)) - 1.0
        total = jnp.sum(jnp.abs(F), axis=-1, keepdims=True) * inv_nt   # (TH, 1)

        # ----- Brocher / Constant velocity & density updates (Horner form) -----
        b = b_ref[...].astype(jnp.float32)                           # (TH, Nv)
        if initial_method == 'Brocher':
            a = 0.9409 + b * (2.0947 + b * (-0.8206 + b * (0.2683 + b * (-0.0251))))
            rho = a * (1.6612 + a * (-0.4721 + a * (0.0671
                                                    + a * (-0.0043 + a * 0.000106))))
            a_ref[...] = a.astype(a_ref.dtype)
            rho_ref[...] = rho.astype(rho_ref.dtype)
        elif initial_method == 'Constant':
            a_ref[...] = (vp_vs_ratio * b).astype(a_ref.dtype)

        # ----- vertical smoothing: tridiagonal stencil == L0 @ b[i, :] -----
        # (replicate-boundary shifts reproduce L0[0,0]=L0[-1,-1]=1 exactly)
        if use_lv:
            mv = 2.0 * b - bl_ref[...].astype(jnp.float32) - br_ref[...].astype(jnp.float32)
            total = total + v_scale * jnp.sum(jnp.abs(mv), axis=-1, keepdims=True)

        # ----- horizontal smoothing: stencil across stations (rows of L1 @ b) --
        # +-1 station neighbours were baked into bu/bd in the wrapper, so the
        # term tiles over Nh with no halo and no (Nh, Nh) operator.
        if use_lh:
            mh = 2.0 * b - bu_ref[...].astype(jnp.float32) - bd_ref[...].astype(jnp.float32)
            total = total + h_scale * jnp.sum(jnp.abs(mh), axis=-1, keepdims=True)

        # (Nh, 1) output is tiny; kept column-shaped to avoid an in-kernel
        # sublane->lane transpose just to make the store lane-dense.
        out_ref[...] = total.astype(out_ref.dtype)

    return kernel


# ---------------------------------------------------------------------------
# Wrapper
# ---------------------------------------------------------------------------
@functools.partial(jax.jit, static_argnames=(
    "damp_vertical", "damp_horizontal", "compress", "normalized",
    "compress_method", "initial_method", "vp_vs_ratio", "det_layout",
    "max_tile_nh"))
def multi_cal_grad_forward(F, det, b, a, rho, *,
                           damp_vertical=1.0, damp_horizontal=0.5,
                           compress=True, normalized=True,
                           compress_method='exp',
                           initial_method='Brocher', vp_vs_ratio=1.73,
                           det_layout='nct', max_tile_nh=256):
    """F: (Nh, Nt) misfit determinant; det: Clist-scan determinant either in the
    native torch layout (Nh, Nc, Nt) [det_layout='nct'] or lane-dense
    (Nh, Nt, Nc) [det_layout='ntc'] — prefer 'ntc' when Nt is not a multiple of
    128; b/a/rho: (Nh, Nv).  Returns (F_return (Nh,), a_new, rho_new)."""
    Nh, Nv = b.shape
    Nt = F.shape[-1]

    use_det = bool(compress and normalized)
    use_lv = damp_vertical > 0
    use_lh = damp_horizontal > 0
    out_a = initial_method in ('Brocher', 'Constant')
    out_rho = initial_method == 'Brocher'

    if use_det:
        det_clist_axis = 1 if det_layout == 'nct' else 2
        Nc = det.shape[det_clist_axis]
    else:
        det_clist_axis, Nc = 1, 0

    # --- generation-aware VMEM budgets + padding-aware tile sizing [R1,R3,R4] ---
    phys_cap, slab_budget, vmem_limit = _vmem_budgets()

    def _bytes_at(th):
        tot = _block_bytes((th, Nt), F.dtype)
        if use_det:
            tot += _block_bytes((th,) + tuple(det.shape[1:]), det.dtype)
        n_b_like = 1 + 2 * int(use_lv) + 2 * int(use_lh) + int(out_a) + int(out_rho)
        tot += n_b_like * _block_bytes((th, Nv), b.dtype)
        tot += _block_bytes((th, 1), jnp.float32)
        return tot

    TH = _pick_tile_nh(Nh, _bytes_at, slab_budget, max_tile_nh)
    grid = (pl.cdiv(Nh, TH),)                         # partial last block OK [R8]
    vmem_limit = min(phys_cap * 15 // 16,
                     max(vmem_limit, 2 * _bytes_at(TH) + (4 << 20)))

    rng_chunk = _pick_rng_chunk(Nc, TH, Nt, lane_reduce=(det_clist_axis == 2)) \
        if use_det else 1

    # --- BlockSpecs ---
    def _row_spec():
        return pl.BlockSpec((TH, Nv), lambda i: (i, 0))

    args = [F]
    in_specs = [pl.BlockSpec((TH, Nt), lambda i: (i, 0))]
    if use_det:
        args.append(det)
        in_specs.append(pl.BlockSpec((TH,) + tuple(det.shape[1:]),
                                     lambda i: (i, 0, 0)))
    args.append(b)
    in_specs.append(_row_spec())
    if use_lv:
        # shifted copies of the (tiny) b array for the vertical tridiagonal stencil
        b_left = jnp.concatenate([b[:, :1], b[:, :-1]], axis=1)
        b_right = jnp.concatenate([b[:, 1:], b[:, -1:]], axis=1)
        args += [b_left, b_right]
        in_specs += [_row_spec(), _row_spec()]
    if use_lh:
        # station-neighbour halo baked in host-side (cross-tile coupling)
        b_up = jnp.concatenate([b[:1, :], b[:-1, :]], axis=0)
        b_dn = jnp.concatenate([b[1:, :], b[-1:, :]], axis=0)
        args += [b_up, b_dn]
        in_specs += [_row_spec(), _row_spec()]

    out_shape = [jax.ShapeDtypeStruct((Nh, 1), jnp.float32)]
    out_specs = [pl.BlockSpec((TH, 1), lambda i: (i, 0))]
    if out_a:
        out_shape.append(jax.ShapeDtypeStruct((Nh, Nv), b.dtype))
        out_specs.append(_row_spec())
    if out_rho:
        out_shape.append(jax.ShapeDtypeStruct((Nh, Nv), b.dtype))
        out_specs.append(_row_spec())

    kernel = _build_kernel(
        use_det=use_det, det_clist_axis=det_clist_axis, nc=Nc,
        rng_chunk=rng_chunk, use_lv=use_lv, use_lh=use_lh,
        out_a=out_a, out_rho=out_rho,
        compress=compress, normalized=normalized,
        compress_method=compress_method, initial_method=initial_method,
        vp_vs_ratio=vp_vs_ratio,
        damp_vertical=damp_vertical, damp_horizontal=damp_horizontal,
        n_t=Nt, n_v=Nv)

    results = pl.pallas_call(
        kernel,
        grid=grid,
        in_specs=in_specs,
        out_specs=tuple(out_specs),
        out_shape=tuple(out_shape),
        compiler_params=pltpu.CompilerParams(
            # Station tiles are fully independent -> megacore-shardable on v7x.
            dimension_semantics=("parallel",),
            vmem_limit_bytes=int(vmem_limit),
        ),
    )(*args)

    total = results[0][:, 0]
    idx = 1
    a_new = results[idx] if out_a else a
    idx += int(out_a)
    rho_new = results[idx] if out_rho else rho
    return total, a_new, rho_new


# ---------------------------------------------------------------------------
# Pure-JAX reference (mirrors the torch forward line by line; det in native
# (Nh, Nc, Nt) layout)
# ---------------------------------------------------------------------------
def reference_forward(F, det, b, a0, rho0, *, damp_v, damp_h, compress=True,
                      normalized=True, compress_method='exp',
                      initial_method='Brocher', vp_vs_ratio=1.73):
    Nh, Nv = b.shape
    a, rho = a0, rho0
    if initial_method == 'Brocher':
        a = 0.9409 + 2.0947 * b - 0.8206 * b**2 + 0.2683 * b**3 - 0.0251 * b**4
        rho = (1.6612 * a - 0.4721 * a**2 + 0.0671 * a**3
               - 0.0043 * a**4 + 0.000106 * a**5)
    elif initial_method == 'Constant':
        a = b * vp_vs_ratio
    Fc = F
    if compress:
        if normalized:
            rng = jnp.max(det, axis=1) - jnp.min(det, axis=1)
            Fc = F / rng
            if compress_method == 'log':
                Fc = jnp.log(jnp.abs(Fc) + 1.0)
            elif compress_method == 'exp':
                Fc = 0.1 ** jnp.abs(Fc) - 1.0
        else:
            Fc = 0.1 ** jnp.abs(F) - 1.0
    total = jnp.sum(jnp.abs(Fc), axis=1) / F.shape[-1]
    if damp_v > 0:
        Lv = _laplacian(Nv)
        mv = damp_v * jnp.einsum('ij,bj->bi', Lv, b, precision='highest') / Nv
        total = total + jnp.sum(jnp.abs(mv), axis=1)
    if damp_h > 0:
        Lh = _laplacian(Nh)
        mh = damp_h * jnp.matmul(Lh, b, precision='highest') / Nv
        total = total + jnp.sum(jnp.abs(mh), axis=1)
    return total, a, rho


if __name__ == "__main__":
    key = jax.random.PRNGKey(0)
    Nh, Nv, Nt, Nc = 16, 8, 16, 128   # stations, layers, periods, Clist points

    k1, k2, k3, k4 = jax.random.split(key, 4)
    b = 2.0 + 2.0 * jax.random.uniform(k1, (Nh, Nv), dtype=jnp.float32)
    a0 = 1.73 * b
    rho0 = 1.0 + jax.random.uniform(k2, (Nh, Nv), dtype=jnp.float32)
    # F / det stand in for the external dltar_vector / dltar_matrix outputs.
    F = jax.random.normal(k3, (Nh, Nt), dtype=jnp.float32)
    det_nct = jax.random.normal(k4, (Nh, Nc, Nt), dtype=jnp.float32)   # torch layout
    det_ntc = jnp.swapaxes(det_nct, 1, 2)   # lane-dense layout (as if emitted upstream)

    # Config 1: module defaults (Brocher, exp compression, both regularizers),
    # lane-dense det ('ntc') -> fully lane-utilized VPU reduction; with Nh=16 the
    # tile picker guarantees a 2-step "parallel" grid (megacore/pipelining).
    out, a_new, rho_new = multi_cal_grad_forward(
        F, det_ntc, b, a0, rho0,
        damp_vertical=1.0, damp_horizontal=0.5,
        compress=True, normalized=True, compress_method='exp',
        initial_method='Brocher', vp_vs_ratio=1.73, det_layout='ntc')
    jax.block_until_ready((out, a_new, rho_new))

    ref_out, ref_a, ref_rho = reference_forward(
        F, det_nct, b, a0, rho0, damp_v=1.0, damp_h=0.5,
        compress=True, normalized=True, compress_method='exp',
        initial_method='Brocher')
    assert out.shape == (Nh,)
    assert jnp.allclose(out, ref_out, rtol=1e-3, atol=1e-3)
    assert jnp.allclose(a_new, ref_a, rtol=1e-4, atol=1e-4)
    assert jnp.allclose(rho_new, ref_rho, rtol=1e-4, atol=1e-4)

    # Config 2: native det layout ('nct'), log compression, 'Constant' vp update,
    # no horizontal damping -> exercises the conditional in/out specs and the
    # sublane-axis Clist reduction path.
    out2, a2, rho2 = multi_cal_grad_forward(
        F, det_nct, b, a0, rho0,
        damp_vertical=1.0, damp_horizontal=0.0,
        compress=True, normalized=True, compress_method='log',
        initial_method='Constant', vp_vs_ratio=1.73, det_layout='nct')
    jax.block_until_ready((out2, a2, rho2))

    ref_out2, ref_a2, ref_rho2 = reference_forward(
        F, det_nct, b, a0, rho0, damp_v=1.0, damp_h=0.0,
        compress=True, normalized=True, compress_method='log',
        initial_method='Constant')
    assert jnp.allclose(out2, ref_out2, rtol=1e-3, atol=1e-3)
    assert jnp.allclose(a2, ref_a2, rtol=1e-5, atol=1e-5)
    assert jnp.allclose(rho2, rho0)   # rho untouched by 'Constant'

    print("KERNEL_OK")
</pallas_src>

<mosaic_0001>
module attributes {stable_mosaic.version = 11 : i64} {
  func.func @kernel(%arg0: i32, %arg1: memref<8x16xf32, #tpu.memory_space<vmem>>, %arg2: memref<8x16x128xf32, #tpu.memory_space<vmem>>, %arg3: memref<8x8xf32, #tpu.memory_space<vmem>>, %arg4: memref<8x8xf32, #tpu.memory_space<vmem>>, %arg5: memref<8x8xf32, #tpu.memory_space<vmem>>, %arg6: memref<8x8xf32, #tpu.memory_space<vmem>>, %arg7: memref<8x8xf32, #tpu.memory_space<vmem>>, %arg8: memref<8x1xf32, #tpu.memory_space<vmem>>, %arg9: memref<8x8xf32, #tpu.memory_space<vmem>>, %arg10: memref<8x8xf32, #tpu.memory_space<vmem>>) attributes {dimension_semantics = [#tpu.dimension_semantics<parallel>], iteration_bounds = array<i64: 2>, scalar_prefetch = 0 : i64, scratch_operands = 0 : i64, tpu.core_type = #tpu.core_type<tc>, window_params = [{transform_indices = @transform_0, window_bounds = array<i64: 8, 16>}, {transform_indices = @transform_1, window_bounds = array<i64: 8, 16, 128>}, {transform_indices = @transform_2, window_bounds = array<i64: 8, 8>}, {transform_indices = @transform_3, window_bounds = array<i64: 8, 8>}, {transform_indices = @transform_4, window_bounds = array<i64: 8, 8>}, {transform_indices = @transform_5, window_bounds = array<i64: 8, 8>}, {transform_indices = @transform_6, window_bounds = array<i64: 8, 8>}, {transform_indices = @transform_7, window_bounds = array<i64: 8, 1>}, {transform_indices = @transform_8, window_bounds = array<i64: 8, 8>}, {transform_indices = @transform_9, window_bounds = array<i64: 8, 8>}]} {
    %c0 = arith.constant 0 : index
    %c0_0 = arith.constant 0 : index
    %0 = vector.load %arg1[%c0, %c0_0] : memref<8x16xf32, #tpu.memory_space<vmem>>, vector<8x16xf32>
    %c0_1 = arith.constant 0 : index
    %c0_2 = arith.constant 0 : index
    %c0_3 = arith.constant 0 : index
    %1 = vector.load %arg2[%c0_1, %c0_2, %c0_3] : memref<8x16x128xf32, #tpu.memory_space<vmem>>, vector<8x16x128xf32>
    %cst = arith.constant dense<0xFF800000> : vector<8x16xf32>
    %2 = vector.multi_reduction <maximumf>, %1, %cst [2] : vector<8x16x128xf32> to vector<8x16xf32>
    %cst_4 = arith.constant dense<0x7F800000> : vector<8x16xf32>
    %3 = vector.multi_reduction <minimumf>, %1, %cst_4 [2] : vector<8x16x128xf32> to vector<8x16xf32>
    %4 = arith.subf %2, %3 : vector<8x16xf32>
    %5 = arith.divf %0, %4 : vector<8x16xf32>
    %6 = math.absf %5 : vector<8x16xf32>
    %cst_5 = arith.constant -2.30258512 : f32
    %7 = vector.broadcast %cst_5 : f32 to vector<8x16xf32>
    %8 = arith.mulf %7, %6 : vector<8x16xf32>
    %9 = math.exp %8 : vector<8x16xf32>
    %cst_6 = arith.constant 1.000000e+00 : f32
    %10 = vector.broadcast %cst_6 : f32 to vector<8x16xf32>
    %11 = arith.subf %9, %10 : vector<8x16xf32>
    %12 = math.absf %11 : vector<8x16xf32>
    %cst_7 = arith.constant dense<0.000000e+00> : vector<8xf32>
    %13 = vector.multi_reduction <add>, %12, %cst_7 [1] : vector<8x16xf32> to vector<8xf32>
    %14 = vector.shape_cast %13 : vector<8xf32> to vector<8x1xf32>
    %cst_8 = arith.constant 6.250000e-02 : f32
    %15 = vector.broadcast %cst_8 : f32 to vector<8x1xf32>
    %16 = arith.mulf %14, %15 : vector<8x1xf32>
    %c0_9 = arith.constant 0 : index
    %c0_10 = arith.constant 0 : index
    %17 = vector.load %arg3[%c0_9, %c0_10] : memref<8x8xf32, #tpu.memory_space<vmem>>, vector<8x8xf32>
    %cst_11 = arith.constant -2.510000e-02 : f32
    %18 = vector.broadcast %cst_11 : f32 to vector<8x8xf32>
    %19 = arith.mulf %17, %18 : vector<8x8xf32>
    %cst_12 = arith.constant 2.683000e-01 : f32
    %20 = vector.broadcast %cst_12 : f32 to vector<8x8xf32>
    %21 = arith.addf %20, %19 : vector<8x8xf32>
    %22 = arith.mulf %17, %21 : vector<8x8xf32>
    %cst_13 = arith.constant -0.820599973 : f32
    %23 = vector.broadcast %cst_13 : f32 to vector<8x8xf32>
    %24 = arith.addf %23, %22 : vector<8x8xf32>
    %25 = arith.mulf %17, %24 : vector<8x8xf32>
    %cst_14 = arith.constant 2.094700e+00 : f32
    %26 = vector.broadcast %cst_14 : f32 to vector<8x8xf32>
    %27 = arith.addf %26, %25 : vector<8x8xf32>
    %28 = arith.mulf %17, %27 : vector<8x8xf32>
    %cst_15 = arith.constant 9.409000e-01 : f32
    %29 = vector.broadcast %cst_15 : f32 to vector<8x8xf32>
    %30 = arith.addf %29, %28 : vector<8x8xf32>
    %cst_16 = arith.constant 1.060000e-04 : f32
    %31 = vector.broadcast %cst_16 : f32 to vector<8x8xf32>
    %32 = arith.mulf %30, %31 : vector<8x8xf32>
    %cst_17 = arith.constant -4.300000e-03 : f32
    %33 = vector.broadcast %cst_17 : f32 to vector<8x8xf32>
    %34 = arith.addf %33, %32 : vector<8x8xf32>
    %35 = arith.mulf %30, %34 : vector<8x8xf32>
    %cst_18 = arith.constant 6.710000e-02 : f32
    %36 = vector.broadcast %cst_18 : f32 to vector<8x8xf32>
    %37 = arith.addf %36, %35 : vector<8x8xf32>
    %38 = arith.mulf %30, %37 : vector<8x8xf32>
    %cst_19 = arith.constant -4.721000e-01 : f32
    %39 = vector.broadcast %cst_19 : f32 to vector<8x8xf32>
    %40 = arith.addf %39, %38 : vector<8x8xf32>
    %41 = arith.mulf %30, %40 : vector<8x8xf32>
    %cst_20 = arith.constant 1.661200e+00 : f32
    %42 = vector.broadcast %cst_20 : f32 to vector<8x8xf32>
    %43 = arith.addf %42, %41 : vector<8x8xf32>
    %44 = arith.mulf %30, %43 : vector<8x8xf32>
    %c0_21 = arith.constant 0 : index
    %c0_22 = arith.constant 0 : index
    %45 = vector.load %arg9[%c0_21, %c0_22] : memref<8x8xf32, #tpu.memory_space<vmem>>, vector<8x8xf32>
    tpu.vector_store %arg9[%c0_21, %c0_22], %30 {strides = array<i32>} : memref<8x8xf32, #tpu.memory_space<vmem>>, vector<8x8xf32>,
    %c0_23 = arith.constant 0 : index
    %c0_24 = arith.constant 0 : index
    %46 = vector.load %arg10[%c0_23, %c0_24] : memref<8x8xf32, #tpu.memory_space<vmem>>, vector<8x8xf32>
    tpu.vector_store %arg10[%c0_23, %c0_24], %44 {strides = array<i32>} : memref<8x8xf32, #tpu.memory_space<vmem>>, vector<8x8xf32>,
    %cst_25 = arith.constant 2.000000e+00 : f32
    %47 = vector.broadcast %cst_25 : f32 to vector<8x8xf32>
    %48 = arith.mulf %47, %17 : vector<8x8xf32>
    %c0_26 = arith.constant 0 : index
    %c0_27 = arith.constant 0 : index
    %49 = vector.load %arg4[%c0_26, %c0_27] : memref<8x8xf32, #tpu.memory_space<vmem>>, vector<8x8xf32>
    %50 = arith.subf %48, %49 : vector<8x8xf32>
    %c0_28 = arith.constant 0 : index
    %c0_29 = arith.constant 0 : index
    %51 = vector.load %arg5[%c0_28, %c0_29] : memref<8x8xf32, #tpu.memory_space<vmem>>, vector<8x8xf32>
    %52 = arith.subf %50, %51 : vector<8x8xf32>
    %53 = math.absf %52 : vector<8x8xf32>
    %cst_30 = arith.constant dense<0.000000e+00> : vector<8xf32>
    %54 = vector.multi_reduction <add>, %53, %cst_30 [1] : vector<8x8xf32> to vector<8xf32>
    %55 = vector.shape_cast %54 : vector<8xf32> to vector<8x1xf32>
    %cst_31 = arith.constant 1.250000e-01 : f32
    %56 = vector.broadcast %cst_31 : f32 to vector<8x1xf32>
    %57 = arith.mulf %56, %55 : vector<8x1xf32>
    %58 = arith.addf %16, %57 : vector<8x1xf32>
    %cst_32 = arith.constant 2.000000e+00 : f32
    %59 = vector.broadcast %cst_32 : f32 to vector<8x8xf32>
    %60 = arith.mulf %59, %17 : vector<8x8xf32>
    %c0_33 = arith.constant 0 : index
    %c0_34 = arith.constant 0 : index
    %61 = vector.load %arg6[%c0_33, %c0_34] : memref<8x8xf32, #tpu.memory_space<vmem>>, vector<8x8xf32>
    %62 = arith.subf %60, %61 : vector<8x8xf32>
    %c0_35 = arith.constant 0 : index
    %c0_36 = arith.constant 0 : index
    %63 = vector.load %arg7[%c0_35, %c0_36] : memref<8x8xf32, #tpu.memory_space<vmem>>, vector<8x8xf32>
    %64 = arith.subf %62, %63 : vector<8x8xf32>
    %65 = math.absf %64 : vector<8x8xf32>
    %cst_37 = arith.constant dense<0.000000e+00> : vector<8xf32>
    %66 = vector.multi_reduction <add>, %65, %cst_37 [1] : vector<8x8xf32> to vector<8xf32>
    %67 = vector.shape_cast %66 : vector<8xf32> to vector<8x1xf32>
    %cst_38 = arith.constant 6.250000e-02 : f32
    %68 = vector.broadcast %cst_38 : f32 to vector<8x1xf32>
    %69 = arith.mulf %68, %67 : vector<8x1xf32>
    %70 = arith.addf %58, %69 : vector<8x1xf32>
    %c0_39 = arith.constant 0 : index
    %c0_40 = arith.constant 0 : index
    %71 = vector.load %arg8[%c0_39, %c0_40] : memref<8x1xf32, #tpu.memory_space<vmem>>, vector<8x1xf32>
    tpu.vector_store %arg8[%c0_39, %c0_40], %70 {strides = array<i32>} : memref<8x1xf32, #tpu.memory_space<vmem>>, vector<8x1xf32>,
    return
  }
  func.func @transform_0(%arg0: i32) -> (i32, i32) {
    %c0_i32 = arith.constant 0 : i32
    %c0_i32_0 = arith.constant 0 : i32
    return %arg0, %c0_i32 : i32, i32
  }
  func.func @transform_1(%arg0: i32) -> (i32, i32, i32) {
    %c0_i32 = arith.constant 0 : i32
    %c0_i32_0 = arith.constant 0 : i32
    %c0_i32_1 = arith.constant 0 : i32
    return %arg0, %c0_i32, %c0_i32_0 : i32, i32, i32
  }
  func.func @transform_2(%arg0: i32) -> (i32, i32) {
    %c0_i32 = arith.constant 0 : i32
    %c0_i32_0 = arith.constant 0 : i32
    return %arg0, %c0_i32 : i32, i32
  }
  func.func @transform_3(%arg0: i32) -> (i32, i32) {
    %c0_i32 = arith.constant 0 : i32
    %c0_i32_0 = arith.constant 0 : i32
    return %arg0, %c0_i32 : i32, i32
  }
  func.func @transform_4(%arg0: i32) -> (i32, i32) {
    %c0_i32 = arith.constant 0 : i32
    %c0_i32_0 = arith.constant 0 : i32
    return %arg0, %c0_i32 : i32, i32
  }
  func.func @transform_5(%arg0: i32) -> (i32, i32) {
    %c0_i32 = arith.constant 0 : i32
    %c0_i32_0 = arith.constant 0 : i32
    return %arg0, %c0_i32 : i32, i32
  }
  func.func @transform_6(%arg0: i32) -> (i32, i32) {
    %c0_i32 = arith.constant 0 : i32
    %c0_i32_0 = arith.constant 0 : i32
    return %arg0, %c0_i32 : i32, i32
  }
  func.func @transform_7(%arg0: i32) -> (i32, i32) {
    %c0_i32 = arith.constant 0 : i32
    %c0_i32_0 = arith.constant 0 : i32
    return %arg0, %c0_i32 : i32, i32
  }
  func.func @transform_8(%arg0: i32) -> (i32, i32) {
    %c0_i32 = arith.constant 0 : i32
    %c0_i32_0 = arith.constant 0 : i32
    return %arg0, %c0_i32 : i32, i32
  }
  func.func @transform_9(%arg0: i32) -> (i32, i32) {
    %c0_i32 = arith.constant 0 : i32
    %c0_i32_0 = arith.constant 0 : i32
    return %arg0, %c0_i32 : i32, i32
  }
}

</mosaic_0001>

<bundles_post_ra>
// kernel: multi_cal_grad_forward.1
= control target key start
LH: loop header
LB: loop body
LE: loop exit
PB: predicated region body
PF: predicated region fallthrough
CT: control target
= control target key end

     0   :  { %s998_s30 = smov 0   ;;  %s1088_s0 = inlined_call_operand.vmem [shape: f32[16,16], index: 0, kind: input, shape index: {}]   ;;  %s1089_s1 = inlined_call_operand.vmem [shape: f32[16,16,128], index: 1, kind: input, shape index: {}]   ;;  %s1090_s2 = inlined_call_operand.vmem [shape: f32[16,8], index: 2, kind: input, shape index: {}]   ;;  %s1091_s3 = inlined_call_operand.vmem [shape: f32[16,8], index: 3, kind: input, shape index: {}]   ;;  %s1092_s4 = inlined_call_operand.vmem [shape: f32[16,8], index: 4, kind: input, shape index: {}]   ;;  %s1093_s5 = inlined_call_operand.vmem [shape: f32[16,8], index: 5, kind: input, shape index: {}]   ;;  %s1094_s6 = inlined_call_operand.vmem [shape: f32[16,8], index: 6, kind: input, shape index: {}]   ;;  %s1095_s7 = inlined_call_operand.vmem [shape: f32[16,1], index: 7, kind: output, shape index: {0}]   ;;  %s1096_s8 = inlined_call_operand.vmem [shape: f32[16,8], index: 8, kind: output, shape index: {1}]   ;;  %s1097_s9 = inlined_call_operand.vmem [shape: f32[16,8], index: 9, kind: output, shape index: {2}]  }
   0x1 LB: > { %s1004_s10 = sadd.s32 4294967295, %s946_s30   ;;  %p911_p0 = scmp.ge.s32.totalorder %s946_s30, 1  ;;  %s946_s30 = sphi %s998_s30, %s20_s30  }
   0x2   : > { %p348_p1 = scmp.lt.s32.totalorder %s946_s30, 3 }
   0x4   : > { %p349_p2 = pnand %p911_p0, %p348_p1 }
   0x5   : > { %s913_s11 = sshll.u32 (!%p349_p2), %s1004_s10, 3  ;;  %p416_p4 = scmp.lt.s32.totalorder (!%p349_p2), %s1004_s10, 1 }
   0x6   : > { %352 = sbr.rel (%p349_p2) target bundleno = 407 (0x197), region = 48  ;;  %p421_p3 = scmp.lt.s32.totalorder (!%p349_p2), %s913_s11, 15 }
   0xb   : > { %s1099_s11 = smov (!%p421_p3, %s913_s11), 15  ;;  %s1101_s10 = smov (!%p416_p4, %s1004_s10), 1  ;;  %vm694_vm0 = vcmask 64512   ;;  %vm583_vm1 = vcmask 130112   ;;  %vm648_vm2 = vcmask 1041409   ;;  %vm650_vm3 = vcmask 1042434  }
   0xc   : > { %s927_s12 = sshll.u32 %s1099_s11, 4  ;;  %s1032_s16 = sshll.u32 %s1101_s10, 3  ;;  %vm652_vm4 = vcmask 1043459   ;;  %vm654_vm5 = vcmask 1044484   ;;  %vm656_vm6 = vcmask 1045509   ;;  %vm658_vm7 = vcmask 1046534  }
   0xd   : > { %s1012_s15 = scalar_lea.vmem %s1089_s1, %s927_s12  ;;  %s430_s19 = scalar_lea.vmem %s1090_s2, %s1032_s16  ;;  %vm660_vm8 = vcmask 1047559   ;;  %vm671_vm9 = vcmask 130048   ;;  %vm718_vm10 = vcmask 7168  }
   0xe   : > { %v462_v0 = vld [vmem:[%s1012_s15 + $0x10] sm:$0xff]  ;;  %v460_v1 = vld [vmem:[%s1012_s15] sm:$0xff]  ;;  %v463_v2 = vld [vmem:[%s1012_s15 + $0x18] sm:$0xff]  ;;  %s434_s22 = scalar_lea.vmem %s1091_s3, %s1032_s16  ;;  %s438_s25 = scalar_lea.vmem %s1092_s4, %s1032_s16 }
   0xf   : > { %480 = vmax.xlane.f32.xlu1 %v462_v0  ;;  %476 = vmax.xlane.f32.xlu0 %v460_v1  ;;  %v461_v3 = vld [vmem:[%s1012_s15 + $0x8] sm:$0xff]  ;;  %v464_v5 = vld [vmem:[%s1012_s15 + $0x20] sm:$0xff]  ;;  %v467_v6 = vld [vmem:[%s1012_s15 + $0x38] sm:$0xff]  ;;  %s454_s28 = scalar_lea.vmem %s1096_s8, %s1032_s16  ;;  %s442_s11 = scalar_lea.vmem %s1093_s5, %s1032_s16 }
  0x10   : > { %v465_v4 = vld [vmem:[%s1012_s15 + $0x28] sm:$0xff]  ;;  %v466_v7 = vld [vmem:[%s1012_s15 + $0x30] sm:$0xff]  ;;  %v468_v9 = vld [vmem:[%s1012_s15 + $0x40] sm:$0xff]  ;;  %s458_s14 = scalar_lea.vmem %s1097_s9, %s1032_s16  ;;  %s446_s18 = scalar_lea.vmem %s1094_s6, %s1032_s16 }
  0x11   : > { %v469_v8 = vld [vmem:[%s1012_s15 + $0x48] sm:$0xff]  ;;  %v471_v10 = vld [vmem:[%s1012_s15 + $0x58] sm:$0xff]  ;;  %v470_v11 = vld [vmem:[%s1012_s15 + $0x50] sm:$0xff]  ;;  %s419_s21 = scalar_lea.vmem %s1088_s0, %s1032_s16  ;;  %s450_s24 = scalar_lea.vmem %s1095_s7, %s1032_s16 }
  0x12   : > { %v473_v12 = vld [vmem:[%s1012_s15 + $0x68] sm:$0xff]  ;;  %v472_v13 = vld [vmem:[%s1012_s15 + $0x60] sm:$0xff]  ;;  %v475_v14 = vld [vmem:[%s1012_s15 + $0x78] sm:$0xff] }
  0x13   : > { %482 = vmax.xlane.f32.xlu1 %v463_v2  ;;  %478 = vmax.xlane.f32.xlu0 %v461_v3  ;;  %v474_v15 = vld [vmem:[%s1012_s15 + $0x70] sm:$0xff]  ;;  %v676_v16 = vld [vmem:[%s430_s19] sm:$0xff] }
  0x14   : > { %v698_v17 = vld [vmem:[%s434_s22] sm:$0xff]  ;;  %v697_v18 = vmul.f32 2.0, %v676_v16  ;;  %v677_v19 = vmul.f32 -0.0251, %v676_v16 }
  0x15   : > { %v700_v20 = vld [vmem:[%s438_s25] sm:$0xff] }
  0x16   : > { %v699_v21 = vsub.f32 %v697_v18, %v698_v17  ;;  %v678_v22 = vadd.f32 0.2683, %v677_v19  ;;  %v708_v40 = vld [vmem:[%s442_s11] sm:$0xff] }
  0x17   : > { %510 = vmin.xlane.f32.xlu1 %v461_v3  ;;  %508 = vmin.xlane.f32.xlu0 %v460_v1  ;;  %v709_v41 = vsub.f32 %v697_v18, %v708_v40  ;;  %v710_v43 = vld [vmem:[%s446_s18] sm:$0xff]  ;;  %v572_v3 = vlaneseq }
  0x18   : > { %v701_v23 = vsub.f32 %v699_v21, %v700_v20  ;;  %v679_v24 = vmul.f32 %v678_v22, %v676_v16 }
  0x19   : > { %v711_v44 = vsub.f32 %v709_v41, %v710_v43 }
  0x1a   : > { %v702_v25 = vand.u32 2147483647, %v701_v23  ;;  %v680_v26 = vadd.f32 -0.8206, %v679_v24 }
  0x1b   : > { %514 = vmin.xlane.f32.xlu1 %v463_v2  ;;  %512 = vmin.xlane.f32.xlu0 %v462_v0  ;;  %v712_v45 = vand.u32 2147483647, %v711_v44 }
  0x1c   : > { %v703_v27 = vsel %vm694_vm0, %v702_v25, 0.0  ;;  %v681_v28 = vmul.f32 %v680_v26, %v676_v16 }
  0x1d   : > { %v1066_v46 = vsel %vm694_vm0, %v712_v45, 0.0 }
  0x1e   : > { %v682_v29 = vadd.f32 2.0947, %v681_v28 }
  0x1f   : > { %486 = vmax.xlane.f32.xlu1 %v465_v4  ;;  %484 = vmax.xlane.f32.xlu0 %v464_v5 }
  0x20   : > { %v683_v30 = vmul.f32 %v682_v29, %v676_v16 }
  0x22   : > { %v684_v31 = vadd.f32 0.9409, %v683_v30 }
  0x23   : > { %518 = vmin.xlane.f32.xlu1 %v465_v4  ;;  %516 = vmin.xlane.f32.xlu0 %v464_v5 }
  0x24   : > { %v685_v32 = vmul.f32 0.000106, %v684_v31  ;;  %695 = vst.msk [vmem:[%s454_s28] sm:$0xff] %vm694_vm0, %v684_v31 }
  0x26   : > { %v686_v33 = vadd.f32 -0.0043, %v685_v32 }
  0x27   : > { %490 = vmax.xlane.f32.xlu1 %v467_v6  ;;  %488 = vmax.xlane.f32.xlu0 %v466_v7 }
  0x28   : > { %v687_v34 = vmul.f32 %v686_v33, %v684_v31 }
  0x2a   : > { %v688_v35 = vadd.f32 0.0671, %v687_v34 }
  0x2b   : > { %522 = vmin.xlane.f32.xlu1 %v467_v6  ;;  %520 = vmin.xlane.f32.xlu0 %v466_v7  ;;  %v573_v6 = vand.u32 127, %v572_v3 }
  0x2c   : > { %v689_v36 = vmul.f32 %v688_v35, %v684_v31 }
  0x2e   : > { %v690_v37 = vadd.f32 -0.4721, %v689_v36 }
  0x2f   : > { %494 = vmax.xlane.f32.xlu1 %v469_v8  ;;  %492 = vmax.xlane.f32.xlu0 %v468_v9 }
  0x30   : > { %v691_v38 = vmul.f32 %v690_v37, %v684_v31 }
  0x32   : > { %v692_v39 = vadd.f32 1.6612, %v691_v38 }
  0x33   : > { %526 = vmin.xlane.f32.xlu1 %v469_v8  ;;  %524 = vmin.xlane.f32.xlu0 %v468_v9  ;;  %v575_v9 = vshrl.u32 %v572_v3, 7 }
  0x34   : > { %v693_v42 = vmul.f32 %v692_v39, %v684_v31 }
  0x35   : > { %v576_v16 = vsub.s32 %v573_v6, %v575_v9 }
  0x36   : > { %696 = vst.msk [vmem:[%s458_s14] sm:$0xff] %vm694_vm0, %v693_v42 }
  0x37   : > { %498 = vmax.xlane.f32.xlu1 %v471_v10  ;;  %496 = vmax.xlane.f32.xlu0 %v470_v11 }
  0x3b   : > { %530 = vmin.xlane.f32.xlu1 %v471_v10  ;;  %528 = vmin.xlane.f32.xlu0 %v470_v11  ;;  %v578_v10 = vadd.s32 4294967288, %v573_v6 }
  0x3f   : > { %502 = vmax.xlane.f32.xlu1 %v473_v12  ;;  %500 = vmax.xlane.f32.xlu0 %v472_v13 }
  0x43   : > { %534 = vmin.xlane.f32.xlu1 %v473_v12  ;;  %532 = vmin.xlane.f32.xlu0 %v472_v13 }
  0x47   : > { %506 = vmax.xlane.f32.xlu1 %v475_v14  ;;  %504 = vmax.xlane.f32.xlu0 %v474_v15 }
  0x4b   : > { %538 = vmin.xlane.f32.xlu1 %v475_v14  ;;  %536 = vmin.xlane.f32.xlu0 %v474_v15  ;;  %v581_v15 = vsub.s32 %v578_v10, %v575_v9 }
  0x4f   : > { %704 = vadd.xlane.f32.xlu1 %v703_v27 }
  0x98   : > { %v481_v47 = vpop.xlane.xlu1 %480  ;;  %v477_v48 = vpop.xlane.xlu0 %476 }
  0x9c   : > { %v483_v49 = vpop.xlane.xlu1 %482  ;;  %v479_v50 = vpop.xlane.xlu0 %478 }
  0xa0   : > { %v511_v51 = vpop.xlane.xlu1 %510  ;;  %v509_v52 = vpop.xlane.xlu0 %508 }
  0xa1   : > { %v541_v19 = vsub.f32 %v479_v50, %v511_v51  ;;  %v540_v20 = vsub.f32 %v477_v48, %v509_v52 }
  0xa3   : > { %v582_v35 = vrot.slane %v541_v19, %v581_v15  ;;  %v577_v36 = vrot.slane %v540_v20, %v576_v16 }
  0xa4   : > { %v515_v53 = vpop.xlane.xlu1 %514  ;;  %v513_v54 = vpop.xlane.xlu0 %512 }
  0xa5   : > { %v543_v13 = vsub.f32 %v483_v49, %v515_v53  ;;  %v542_v14 = vsub.f32 %v481_v47, %v513_v54  ;;  %v584_v50 = vsel %vm583_vm1, %v582_v35, %v577_v36 }
  0xa7   : > { %v592_v27 = vrot.slane %v543_v13, %v581_v15  ;;  %v588_v28 = vrot.slane %v542_v14, %v576_v16 }
  0xa8   : > { %v487_v55 = vpop.xlane.xlu1 %486  ;;  %v485_v56 = vpop.xlane.xlu0 %484 }
  0xa9   : > { %v593_v43 = vsel %vm583_vm1, %v592_v27, %v588_v28 }
  0xaa   : > { %v649_v52 = vsel %vm648_vm2, %v593_v43, %v584_v50 }
  0xac   : > { %v519_v57 = vpop.xlane.xlu1 %518  ;;  %v517_v58 = vpop.xlane.xlu0 %516 }
  0xad   : > { %v545_v17 = vsub.f32 %v487_v55, %v519_v57  ;;  %v544_v18 = vsub.f32 %v485_v56, %v517_v58 }
  0xaf   : > { %v601_v31 = vrot.slane %v545_v17, %v581_v15  ;;  %v597_v32 = vrot.slane %v544_v18, %v576_v16 }
  0xb0   : > { %v491_v59 = vpop.xlane.xlu1 %490  ;;  %v489_v60 = vpop.xlane.xlu0 %488 }
  0xb1   : > { %v602_v47 = vsel %vm583_vm1, %v601_v31, %v597_v32 }
  0xb2   : > { %v651_v56 = vsel %vm650_vm3, %v602_v47, %v649_v52 }
  0xb4   : > { %v523_v61 = vpop.xlane.xlu1 %522  ;;  %v521_v62 = vpop.xlane.xlu0 %520 }
  0xb5   : > { %v547_v21 = vsub.f32 %v491_v59, %v523_v61  ;;  %v546_v22 = vsub.f32 %v489_v60, %v521_v62 }
  0xb7   : > { %v610_v37 = vrot.slane %v547_v21, %v581_v15  ;;  %v606_v38 = vrot.slane %v546_v22, %v576_v16 }
  0xb8   : > { %v495_v63 = vpop.xlane.xlu1 %494  ;;  %v493_v0 = vpop.xlane.xlu0 %492 }
  0xb9   : > { %v611_v51 = vsel %vm583_vm1, %v610_v37, %v606_v38 }
  0xba   : > { %v653_v60 = vsel %vm652_vm4, %v611_v51, %v651_v56 }
  0xbc   : > { %v527_v1 = vpop.xlane.xlu1 %526  ;;  %v525_v2 = vpop.xlane.xlu0 %524 }
  0xbd   : > { %v549_v23 = vsub.f32 %v495_v63, %v527_v1  ;;  %v548_v24 = vsub.f32 %v493_v0, %v525_v2 }
  0xbf   : > { %v619_v39 = vrot.slane %v549_v23, %v581_v15  ;;  %v615_v40 = vrot.slane %v548_v24, %v576_v16 }
  0xc0   : > { %v499_v4 = vpop.xlane.xlu1 %498  ;;  %v497_v5 = vpop.xlane.xlu0 %496 }
  0xc1   : > { %v620_v53 = vsel %vm583_vm1, %v619_v39, %v615_v40 }
  0xc2   : > { %v655_v62 = vsel %vm654_vm5, %v620_v53, %v653_v60 }
  0xc4   : > { %v531_v7 = vpop.xlane.xlu1 %530  ;;  %v529_v8 = vpop.xlane.xlu0 %528 }
  0xc5   : > { %v551_v29 = vsub.f32 %v499_v4, %v531_v7  ;;  %v550_v30 = vsub.f32 %v497_v5, %v529_v8  ;;  %v459_v5 = vld [vmem:[%s419_s21] sm:$0xff] }
  0xc7   : > { %v628_v44 = vrot.slane %v551_v29, %v581_v15  ;;  %v624_v45 = vrot.slane %v550_v30, %v576_v16 }
  0xc8   : > { %v503_v11 = vpop.xlane.xlu1 %502  ;;  %v501_v12 = vpop.xlane.xlu0 %500 }
  0xc9   : > { %v629_v57 = vsel %vm583_vm1, %v628_v44, %v624_v45 }
  0xca   : > { %v657_v1 = vsel %vm656_vm6, %v629_v57, %v655_v62 }
  0xcc   : > { %v535_v25 = vpop.xlane.xlu1 %534  ;;  %v533_v26 = vpop.xlane.xlu0 %532 }
  0xcd   : > { %v553_v33 = vsub.f32 %v503_v11, %v535_v25  ;;  %v552_v34 = vsub.f32 %v501_v12, %v533_v26 }
  0xcf   : > { %v637_v48 = vrot.slane %v553_v33, %v581_v15  ;;  %v633_v49 = vrot.slane %v552_v34, %v576_v16 }
  0xd0   : > { %v507_v41 = vpop.xlane.xlu1 %506  ;;  %v505_v42 = vpop.xlane.xlu0 %504 }
  0xd1   : > { %v638_v61 = vsel %vm583_vm1, %v637_v48, %v633_v49 }
  0xd2   : > { %v659_v2 = vsel %vm658_vm7, %v638_v61, %v657_v1 }
  0xd4   : > { %v539_v54 = vpop.xlane.xlu1 %538  ;;  %v537_v55 = vpop.xlane.xlu0 %536 }
  0xd5   : > { %v555_v58 = vsub.f32 %v507_v41, %v539_v54  ;;  %v554_v59 = vsub.f32 %v505_v42, %v537_v55 }
  0xd7   : > { %v646_v63 = vrot.slane %v555_v58, %v581_v15  ;;  %v642_v0 = vrot.slane %v554_v59, %v576_v16 }
  0xd8   : > { %v705_v15 = vpop.xlane.xlu1 %704 }
  0xd9   : > { %v647_v3 = vsel %vm583_vm1, %v646_v63, %v642_v0  ;;  %v706_v17 = vmul.f32 0.125, %v705_v15 }
  0xda   : > { %v661_v4 = vsel %vm660_vm8, %v647_v3, %v659_v2 }
  0xdb   : > { %936 = vrcp.f32 %v661_v4 }
  0xe8   : > { %v937_v6 = vpop.eup %936 }
  0xe9   : > { %v664_v7 = vmul.f32 %v937_v6, %v459_v5 }
  0xeb   : > { %v665_v8 = vand.u32 2147483647, %v664_v7 }
  0xed   : > { %v666_v9 = vmul.f32 -2.3025851, %v665_v8 }
  0xef   : > { %v667_v10 = vmul.f32 1.442695, %v666_v9 }
  0xf1   : > { %938 = vpow2.f32 %v667_v10 }
  0xfe   : > { %v939_v11 = vpop.eup %938 }
  0xff   : > { %v924_v12 = vadd.f32 -1.0, %v939_v11 }
 0x101   : > { %v670_v13 = vand.u32 2147483647, %v924_v12 }
 0x103   : > { %v672_v14 = vsel %vm671_vm9, %v670_v13, 0.0 }
 0x104   : > { %673 = vadd.xlane.f32.xlu0 %v672_v14 }
 0x108   : > { %714 = vadd.xlane.f32.xlu0 %v1066_v46 }
 0x18d   : > { %v674_v16 = vpop.xlane.xlu0 %673 }
 0x18e   : > { %v675_v18 = vmul.f32 0.0625, %v674_v16 }
 0x190   : > { %v707_v20 = vadd.f32 %v706_v17, %v675_v18 }
 0x191   : > { %v715_v19 = vpop.xlane.xlu0 %714 }
 0x192   : > { %v716_v21 = vmul.f32 0.0625, %v715_v19 }
 0x194   : > { %v717_v22 = vadd.f32 %v716_v21, %v707_v20 }
 0x196   : > { %719 = vst.msk [vmem:[%s450_s24] sm:$0xff] %vm718_vm10, %v717_v22 }
 0x197 PF: > { %s20_s30 = sadd.s32 1, %s946_s30  }
 0x198   : > { %p17_p5 = scmp.ge.s32.totalorder %s20_s30, 4  }
 0x19a   :  { %19 = sbr.rel (!%p17_p5) target bundleno = 1 (0x1), region = 120 }

</bundles_post_ra>
